<compile_context>
chip_gen: v7x
topology: tpu7x:2x2x1
jax: 0.10.0
libtpu: 0.0.40
codegen_flags: <defaults>
</compile_context>

<pallas_src>
import functools

import jax
import jax.numpy as jnp
import numpy as np
from jax import lax
from jax.experimental import pallas as pl
from jax.experimental.pallas import tpu as pltpu


# --------------------------------------------------------------------------- #
# Kernels
# --------------------------------------------------------------------------- #
def _patch_embed_kernel_rowadd(p_ref, w_ref, add_ref, o_ref, *, tb):
    # p_ref:   (TM, K)  patch rows for this block (compute dtype, streamed)
    # w_ref:   (K, O)   fused Conv3d+Linear weight (compute dtype, resident)
    # add_ref: (N, O)   fused bias + per-patch position embedding (f32, resident)
    # o_ref:   (TM, O)  output patch embeddings (f32), TM = tb * N
    acc = jnp.dot(p_ref[...], w_ref[...], preferred_element_type=jnp.float32)
    add = add_ref[...]
    if tb > 1:
        # N % 8 == 0 -> tile-boundary aligned concatenation along the sublane dim.
        add = jnp.concatenate([add] * tb, axis=0)          # (TM, O)
    o_ref[...] = (acc + add).astype(o_ref.dtype)


def _patch_embed_kernel_fulladd(p_ref, w_ref, add_ref, o_ref):
    # Fallback when N is not sublane aligned: add_ref is pre-tiled to (TM, O).
    acc = jnp.dot(p_ref[...], w_ref[...], preferred_element_type=jnp.float32)
    o_ref[...] = (acc + add_ref[...]).astype(o_ref.dtype)


# --------------------------------------------------------------------------- #
# Block sizing helpers
# --------------------------------------------------------------------------- #
def _vmem_capacity_bytes():
    try:
        return int(pltpu.get_tpu_info().vmem_capacity_bytes)
    except Exception:
        return 64 * 1024 * 1024     # conservative: v7x per-TensorCore VMEM


def _pick_frames_per_block(BT, N, K, O, in_bytes, vmem_budget, *,
                           target_rows=1024, sublane=8, min_split_rows=256):
    """Frames per M-block: largest divisor of BT whose block fits the VMEM
    budget and stays <= target_rows MXU rows, sublane-aligned for the compute
    dtype.  Prefers >=2 grid blocks (v7x 2-TensorCore split) only when each
    block keeps >= min_split_rows rows."""

    def block_vmem(tb):
        tm = tb * N
        return (2 * tm * K * in_bytes        # streamed patch rows, double-buffered
                + 2 * K * O * in_bytes       # fused weight (worst case 2 buffers)
                + 2 * N * O * 4              # bias+pos rows
                + 2 * tm * O * 4)            # f32 output block, double-buffered

    def aligned(tb):
        return (tb * N) % sublane == 0 or tb == BT

    divisors = [d for d in range(1, BT + 1) if BT % d == 0]
    fitting = [d for d in divisors if aligned(d) and block_vmem(d) <= vmem_budget]
    if not fitting:                                   # fall back to smallest valid
        fitting = [d for d in divisors if aligned(d)] or [BT]
    under = [d for d in fitting if d * N <= target_rows]
    tb = max(under) if under else min(fitting)
    if BT // tb < 2:                                  # leave work for both v7x TCs
        cands = [d for d in fitting if BT // d >= 2 and d * N >= min_split_rows]
        if cands:
            tb = max(cands)
    return tb


# --------------------------------------------------------------------------- #
# Forward
# --------------------------------------------------------------------------- #
def patch_embedding_forward(x, params, depth, patch, *,
                            method="center",
                            compute_dtype=jnp.bfloat16,
                            frames_per_block=None):
    """x: (B, T, C, H, W) -> (B, T', N+2, O) float32.

    Mirrors PatchEmbedding.forward: stride==kernel Conv3d patchify, Linear,
    [cls, dist] token prepend, + position embeddings."""
    B, T, C, H, W = x.shape
    Tp = (T - depth) // depth + 1
    Hp, Wp = H // patch, W // patch
    N = Hp * Wp
    O = params["w_conv3d"].shape[0]
    BT = B * Tp

    # --- im2col for the stride==kernel patchify conv (cast upstream) --------
    if method == "center":
        # Only the center depth plane of the 3D weight is non-zero, so only the
        # center frame of each depth window contributes: K = C*p*p (3x smaller).
        K = C * patch * patch
        xc = x[:, depth // 2:Tp * depth:depth].astype(compute_dtype)    # (B,Tp,C,H,W)
        xx = xc.reshape(B, Tp, C, Hp, patch, Wp, patch)
        patches = xx.transpose(0, 1, 3, 5, 2, 4, 6).reshape(BT * N, K)  # cols (c,ph,pw)
        w_conv = params["w_conv3d"][:, :, depth // 2].reshape(O, K).T   # (K, O)
    else:
        # Generic Conv3d path ('uniform' construction or fine-tuned weights).
        K = C * depth * patch * patch
        xx = (x[:, :Tp * depth].astype(compute_dtype)
              .reshape(B, Tp, depth, C, Hp, patch, Wp, patch))
        patches = xx.transpose(0, 1, 4, 6, 3, 2, 5, 7).reshape(BT * N, K)
        w_conv = params["w_conv3d"].reshape(O, K).T                     # (K, O)

    # --- fold Linear into Conv (both affine, exact):  y = p @ W' + b' -------
    w_lin_t = params["w_lin"].T.astype(jnp.float32)                     # (O, O)
    w_fused = (w_conv.astype(jnp.float32) @ w_lin_t).astype(compute_dtype)
    b_fused = (params["b_conv"].astype(jnp.float32) @ w_lin_t
               + params["b_lin"].astype(jnp.float32))                   # (O,)

    pos = params["pos"][0].astype(jnp.float32)                          # (N+2, O)
    cls_row = params["cls"].astype(jnp.float32) + pos[0:1]              # (1, O)
    dist_row = params["dist"].astype(jnp.float32) + pos[1:2]            # (1, O)
    add_rows = pos[2:] + b_fused[None, :]                               # (N, O)

    # --- block selection + VMEM budget ---------------------------------------
    in_bytes = np.dtype(compute_dtype).itemsize
    sublane = 16 if in_bytes < 4 else 8
    vmem_cap = _vmem_capacity_bytes()
    if frames_per_block is None:
        frames_per_block = _pick_frames_per_block(
            BT, N, K, O, in_bytes, vmem_budget=int(0.5 * vmem_cap),
            sublane=sublane)
    TB = frames_per_block
    TM = TB * N
    num_blocks = BT // TB

    est_bytes = (2 * TM * K * in_bytes + 2 * K * O * in_bytes
                 + 2 * N * O * 4 + 2 * TM * O * 4)
    vmem_limit = int(min(0.9 * vmem_cap, max(32 * 1024 * 1024, 2 * est_bytes)))

    # --- single fused matmul + add kernel ------------------------------------
    if N % 8 == 0:
        kernel = functools.partial(_patch_embed_kernel_rowadd, tb=TB)
        add_arr = add_rows                                   # (N, O) resident
        add_spec = pl.BlockSpec((N, O), lambda i: (0, 0))
    else:
        kernel = _patch_embed_kernel_fulladd
        add_arr = jnp.tile(add_rows, (TB, 1))                # (TM, O) resident
        add_spec = pl.BlockSpec((TM, O), lambda i: (0, 0))

    patch_out = pl.pallas_call(
        kernel,
        out_shape=jax.ShapeDtypeStruct((BT * N, O), jnp.float32),
        grid=(num_blocks,),
        in_specs=[
            pl.BlockSpec((TM, K), lambda i: (i, 0)),   # streamed patch rows
            pl.BlockSpec((K, O), lambda i: (0, 0)),    # resident fused weight
            add_spec,                                  # resident bias + pos rows
        ],
        out_specs=pl.BlockSpec((TM, O), lambda i: (i, 0)),
        compiler_params=pltpu.CompilerParams(
            dimension_semantics=("parallel",),
            vmem_limit_bytes=vmem_limit),
    )(patches, w_fused, add_arr)

    # cls / distillation rows (+ their pos) are grid-constant -> assembled here.
    patch_out = patch_out.reshape(B, Tp, N, O)
    cls_b = jnp.broadcast_to(cls_row[None, None], (B, Tp, 1, O))
    dist_b = jnp.broadcast_to(dist_row[None, None], (B, Tp, 1, O))
    return jnp.concatenate([cls_b, dist_b, patch_out], axis=-2)


# --------------------------------------------------------------------------- #
# Pure-JAX reference mirroring the PyTorch forward exactly
# --------------------------------------------------------------------------- #
def reference_forward(x, params, depth, patch):
    xc = jnp.transpose(x, (0, 2, 1, 3, 4))            # b t c h w -> b c t h w
    conv = lax.conv_general_dilated(
        xc, params["w_conv3d"],
        window_strides=(depth, patch, patch),
        padding="VALID",
        dimension_numbers=("NCDHW", "OIDHW", "NCDHW"))
    conv = conv + params["b_conv"][None, :, None, None, None]
    B, O, Tp, Hp, Wp = conv.shape
    emb = jnp.transpose(conv, (0, 2, 3, 4, 1)).reshape(B, Tp, Hp * Wp, O)
    emb = emb @ params["w_lin"].T + params["b_lin"]
    cls = jnp.broadcast_to(params["cls"][None, None], (B, Tp, 1, O))
    dist = jnp.broadcast_to(params["dist"][None, None], (B, Tp, 1, O))
    emb = jnp.concatenate([cls, dist, emb], axis=-2)
    return emb + params["pos"]


if __name__ == "__main__":
    # Small, forward-consistent shapes.
    B, T, C, H, W = 2, 8, 4, 16, 16
    patch = 4            # base Conv2d: kernel=stride=4 (standard patch embed)
    O = 32               # conv out_channels / hidden
    depth = 3            # odd -> 'center' method keeps it as-is
    Hp, Wp = H // patch, W // patch
    N = Hp * Wp          # num_patches = 16
    NT = N + 2           # + cls + distillation tokens
    Tp = (T - depth) // depth + 1

    key = jax.random.PRNGKey(0)
    ks = jax.random.split(key, 8)
    # base Conv2d(C, O, kernel_size=patch, stride=patch)
    w2d = jax.random.normal(ks[0], (O, C, patch, patch), jnp.float32) * 0.05
    b_conv = jax.random.normal(ks[1], (O,), jnp.float32) * 0.05
    # _conv2d_to_conv3d(method='center'): zero-pad depth, weight only at center.
    w3d = jnp.zeros((O, C, depth, patch, patch), jnp.float32)
    w3d = w3d.at[:, :, depth // 2].set(w2d)
    # NOTE: cls/dist/pos are zero-initialized in the PyTorch module; we use
    # deterministic random values instead so the kernel output is non-trivial.
    params = {
        "w_conv3d": w3d,
        "b_conv": b_conv,
        "w_lin": jax.random.normal(ks[2], (O, O), jnp.float32) * 0.05,
        "b_lin": jax.random.normal(ks[3], (O,), jnp.float32) * 0.05,
        "cls": jax.random.normal(ks[4], (1, O), jnp.float32) * 0.05,
        "dist": jax.random.normal(ks[5], (1, O), jnp.float32) * 0.05,
        "pos": jax.random.normal(ks[6], (1, NT, O), jnp.float32) * 0.05,
    }
    x = jax.random.normal(ks[7], (B, T, C, H, W), jnp.float32)

    ref = jax.block_until_ready(reference_forward(x, params, depth, patch))

    fwd = jax.jit(patch_embedding_forward,
                  static_argnames=("depth", "patch", "method",
                                   "compute_dtype", "frames_per_block"))

    # f32 / center path: must match reference tightly (fusion is exact algebra,
    # non-center weight planes are exactly zero).
    out_f32 = jax.block_until_ready(
        fwd(x, params, depth=depth, patch=patch, compute_dtype=jnp.float32))
    assert out_f32.shape == (B, Tp, NT, O), out_f32.shape
    np.testing.assert_allclose(np.asarray(out_f32), np.asarray(ref),
                               rtol=1e-4, atol=1e-4)

    # f32 / generic full-Conv3d path (no center-plane slicing): also exact.
    out_full = jax.block_until_ready(
        fwd(x, params, depth=depth, patch=patch, method="full",
            compute_dtype=jnp.float32))
    np.testing.assert_allclose(np.asarray(out_full), np.asarray(ref),
                               rtol=1e-4, atol=1e-4)

    # Default path: bf16 matmul operands (f32 accumulation + f32 elementwise).
    out_bf16 = jax.block_until_ready(fwd(x, params, depth=depth, patch=patch))
    assert out_bf16.shape == (B, Tp, NT, O), out_bf16.shape
    np.testing.assert_allclose(np.asarray(out_bf16), np.asarray(ref),
                               rtol=2e-2, atol=2e-2)

    print("KERNEL_OK")
</pallas_src>

<mosaic_0001>
module attributes {stable_mosaic.version = 11 : i64} {
  func.func @_patch_embed_kernel_rowadd(%arg0: i32, %arg1: memref<64x64xf32, #tpu.memory_space<vmem>>, %arg2: memref<64x32xf32, #tpu.memory_space<vmem>>, %arg3: memref<16x32xf32, #tpu.memory_space<vmem>>, %arg4: memref<64x32xf32, #tpu.memory_space<vmem>>) attributes {dimension_semantics = [#tpu.dimension_semantics<parallel>], iteration_bounds = array<i64: 1>, scalar_prefetch = 0 : i64, scratch_operands = 0 : i64, tpu.core_type = #tpu.core_type<tc>, window_params = [{transform_indices = @transform_0, window_bounds = array<i64: 64, 64>}, {pipeline_mode = #tpu.pipeline_mode<synchronous>, transform_indices = @transform_1, window_bounds = array<i64: 64, 32>}, {pipeline_mode = #tpu.pipeline_mode<synchronous>, transform_indices = @transform_2, window_bounds = array<i64: 16, 32>}, {transform_indices = @transform_3, window_bounds = array<i64: 64, 32>}]} {
    %c0 = arith.constant 0 : index
    %c0_0 = arith.constant 0 : index
    %0 = vector.load %arg1[%c0, %c0_0] : memref<64x64xf32, #tpu.memory_space<vmem>>, vector<64x64xf32>
    %c0_1 = arith.constant 0 : index
    %c0_2 = arith.constant 0 : index
    %1 = vector.load %arg2[%c0_1, %c0_2] : memref<64x32xf32, #tpu.memory_space<vmem>>, vector<64x32xf32>
    %cst = arith.constant dense<0.000000e+00> : vector<64x32xf32>
    %2 = tpu.matmul %0, %1, %cst {dimension_numbers = #tpu.dot_dimension_numbers<[1], [0], [0], [1], [0, 0, 1, 1], [], []>} : vector<64x64xf32>, vector<64x32xf32>, vector<64x32xf32> -> vector<64x32xf32>
    %c0_3 = arith.constant 0 : index
    %c0_4 = arith.constant 0 : index
    %3 = vector.load %arg3[%c0_3, %c0_4] : memref<16x32xf32, #tpu.memory_space<vmem>>, vector<16x32xf32>
    %4 = tpu.concatenate %3, %3, %3, %3 in 0 : vector<16x32xf32>, vector<16x32xf32>, vector<16x32xf32>, vector<16x32xf32> -> vector<64x32xf32>
    %5 = arith.addf %2, %4 : vector<64x32xf32>
    %c0_5 = arith.constant 0 : index
    %c0_6 = arith.constant 0 : index
    %6 = vector.load %arg4[%c0_5, %c0_6] : memref<64x32xf32, #tpu.memory_space<vmem>>, vector<64x32xf32>
    tpu.vector_store %arg4[%c0_5, %c0_6], %5 {strides = array<i32>} : memref<64x32xf32, #tpu.memory_space<vmem>>, vector<64x32xf32>,
    return
  }
  func.func @transform_0(%arg0: i32) -> (i32, i32) {
    %c0_i32 = arith.constant 0 : i32
    %c0_i32_0 = arith.constant 0 : i32
    return %arg0, %c0_i32 : i32, i32
  }
  func.func @transform_1(%arg0: i32) -> (i32, i32) {
    %c0_i32 = arith.constant 0 : i32
    %c0_i32_0 = arith.constant 0 : i32
    %c0_i32_1 = arith.constant 0 : i32
    return %c0_i32, %c0_i32_0 : i32, i32
  }
  func.func @transform_2(%arg0: i32) -> (i32, i32) {
    %c0_i32 = arith.constant 0 : i32
    %c0_i32_0 = arith.constant 0 : i32
    %c0_i32_1 = arith.constant 0 : i32
    return %c0_i32, %c0_i32_0 : i32, i32
  }
  func.func @transform_3(%arg0: i32) -> (i32, i32) {
    %c0_i32 = arith.constant 0 : i32
    %c0_i32_0 = arith.constant 0 : i32
    return %arg0, %c0_i32 : i32, i32
  }
}

</mosaic_0001>

<bundles_post_ra>
// kernel: patch_embedding_forward.1
= control target key start
LH: loop header
LB: loop body
LE: loop exit
PB: predicated region body
PF: predicated region fallthrough
CT: control target
= control target key end

     0   :  { %vm32_vm0 = vcmask 523264   ;;  %vm162_vm1 = vcmask 261120   ;;  %s365_s1 = inlined_call_operand.vmem [shape: f32[64,32], index: 1, kind: input, shape index: {}]   ;;  %s366_s0 = inlined_call_operand.vmem [shape: f32[64,64], index: 0, kind: input, shape index: {}]   ;;  %s367_s2 = inlined_call_operand.vmem [shape: f32[16,32], index: 2, kind: input, shape index: {}]   ;;  %s368_s3 = inlined_call_operand.vmem [shape: f32[64,32], index: 3, kind: output, shape index: {}]  }
   0x1   :  { %v22_v0 = vld [vmem:[%s365_s1] sm:$0xff]  ;;  %v23_v1 = vld [vmem:[%s365_s1 + $0x8] sm:$0xff]  ;;  %v24_v2 = vld [vmem:[%s365_s1 + $0x10] sm:$0xff] }
   0x2   :  { %v227_v3 = vpack.c.bf16 %v23_v1, %v22_v0  ;;  %v25_v4 = vld [vmem:[%s365_s1 + $0x18] sm:$0xff]  ;;  %v26_v6 = vld [vmem:[%s365_s1 + $0x20] sm:$0xff]  ;;  %v27_v7 = vld [vmem:[%s365_s1 + $0x28] sm:$0xff] }
   0x3   :  { %v231_v5 = vpack.c.bf16 %v25_v4, %v24_v2  ;;  %v14_v8 = vld [vmem:[%s366_s0] sm:$0xff]  ;;  %v235_v10 = vpack.c.bf16 %v27_v7, %v26_v6  ;;  %v28_v11 = vld [vmem:[%s365_s1 + $0x30] sm:$0xff]  ;;  %v29_v12 = vld [vmem:[%s365_s1 + $0x38] sm:$0xff] }
   0x4   :  { %228 = vmatprep.subr.bf16.mxu0 %v227_v3  ;;  %243 = vmatprep.subr.bf16.mxu1 %v227_v3  ;;  %v18_v9 = vld [vmem:[%s366_s0 + $0x20] sm:$0xff]  ;;  %v239_v13 = vpack.c.bf16 %v29_v12, %v28_v11  ;;  %v15_v14 = vld [vmem:[%s366_s0 + $0x8] sm:$0xff]  ;;  %v16_v16 = vld [vmem:[%s366_s0 + $0x10] sm:$0xff] }
   0x5   :  { %230 = vmatpush3.bf16.msra.mxu0 %v227_v3  ;;  %247 = vmatpush3.bf16.msra.mxu1 %v227_v3  ;;  %v19_v15 = vld [vmem:[%s366_s0 + $0x28] sm:$0xff]  ;;  %v20_v17 = vld [vmem:[%s366_s0 + $0x30] sm:$0xff]  ;;  %v17_v18 = vld [vmem:[%s366_s0 + $0x18] sm:$0xff] }
   0x6   :  { %232 = vmatprep.subr.bf16.mxu0 %v231_v5  ;;  %244 = vmatprep.subr.bf16.mxu1 %v231_v5  ;;  %v21_v19 = vld [vmem:[%s366_s0 + $0x38] sm:$0xff]  ;;  %v31_v20 = vld [vmem:[%s367_s2 + $0x8] sm:$0xff]  ;;  %v30_v21 = vld [vmem:[%s367_s2] sm:$0xff] }
   0x7   :  { %215 = vmatprep.mubr.msk.f32.mxu0 %vm32_vm0, %v14_v8  ;;  %221 = vmatprep.mubr.msk.f32.mxu1 %vm32_vm0, %v18_v9 }
   0x9   :  { %234 = vmatpush3.bf16.msra.mxu0 %v231_v5  ;;  %248 = vmatpush3.bf16.msra.mxu1 %v231_v5 }
   0xa   :  { %236 = vmatprep.subr.bf16.mxu0 %v235_v10  ;;  %245 = vmatprep.subr.bf16.mxu1 %v235_v10 }
   0xd   :  { %238 = vmatpush3.bf16.msra.mxu0 %v235_v10  ;;  %249 = vmatpush3.bf16.msra.mxu1 %v235_v10 }
   0xe   :  { %240 = vmatprep.subr.bf16.mxu0 %v239_v13  ;;  %246 = vmatprep.subr.bf16.mxu1 %v239_v13 }
  0x11   :  { %242 = vmatpush3.bf16.msra.mxu0 %v239_v13  ;;  %250 = vmatpush3.bf16.msra.mxu1 %v239_v13 }
  0x14   :  { %216 = vmatmul.mubr.msk.f32.vlgmr.msra.gmra.mrb[0].mxu0 %vm32_vm0, %v15_v14  ;;  %222 = vmatmul.mubr.msk.f32.vlgmr.msra.gmra.mrb[0].mxu1 %vm32_vm0, %v19_v15 }
  0x15   :  { %218 = vmatprep.mubr.msk.f32.mxu0 %vm32_vm0, %v16_v16  ;;  %224 = vmatprep.mubr.msk.f32.mxu1 %vm32_vm0, %v20_v17 }
  0x18   :  { %219 = vmatmul.mubr.msk.f32.gmra.mrb[2].mxu0 %vm32_vm0, %v17_v18  ;;  %225 = vmatmul.mubr.msk.f32.gmra.mrb[2].mxu1 %vm32_vm0, %v21_v19 }
  0xe7   :  { %v217_v22 = vpop.f32.mrb[0].mxu0  ;;  %v223_v23 = vpop.f32.mrb[0].mxu1 }
  0xe8   :  { %v129_v24 = vadd.f32 %v217_v22, %v31_v20  ;;  %v149_v25 = vadd.f32 %v223_v23, %v31_v20  ;;  %v123_v26 = vpop.f32.mrb[1].mxu0  ;;  %v143_v27 = vpop.f32.mrb[1].mxu1 }
  0xe9   :  { %v124_v28 = vadd.f32 %v123_v26, %v30_v21  ;;  %v144_v29 = vadd.f32 %v143_v27, %v30_v21 }
  0xea   :  { %164 = vst.msk [vmem:[%s368_s3 + $0x8] sm:$0xff] %vm162_vm1, %v129_v24  ;;  %168 = vst.msk [vmem:[%s368_s3 + $0x28] sm:$0xff] %vm162_vm1, %v149_v25 }
  0xeb   :  { %163 = vst.msk [vmem:[%s368_s3] sm:$0xff] %vm162_vm1, %v124_v28  ;;  %167 = vst.msk [vmem:[%s368_s3 + $0x20] sm:$0xff] %vm162_vm1, %v144_v29  ;;  %v220_v30 = vpop.f32.mrb[2].mxu0  ;;  %v226_v31 = vpop.f32.mrb[2].mxu1 }
  0xec   :  { %v139_v32 = vadd.f32 %v220_v30, %v31_v20  ;;  %v159_v33 = vadd.f32 %v226_v31, %v31_v20  ;;  %v133_v34 = vpop.f32.mrb[3].mxu0  ;;  %v153_v35 = vpop.f32.mrb[3].mxu1 }
  0xed   :  { %v134_v36 = vadd.f32 %v133_v34, %v30_v21  ;;  %v154_v37 = vadd.f32 %v153_v35, %v30_v21 }
  0xee   :  { %166 = vst.msk [vmem:[%s368_s3 + $0x18] sm:$0xff] %vm162_vm1, %v139_v32  ;;  %170 = vst.msk [vmem:[%s368_s3 + $0x38] sm:$0xff] %vm162_vm1, %v159_v33 }
  0xef   :  { %165 = vst.msk [vmem:[%s368_s3 + $0x10] sm:$0xff] %vm162_vm1, %v134_v36  ;;  %169 = vst.msk [vmem:[%s368_s3 + $0x30] sm:$0xff] %vm162_vm1, %v154_v37 }

</bundles_post_ra>
